<compile_context>
chip_gen: v6e
topology: v6e:2x2x1
jax: 0.10.0
libtpu: 0.0.40
codegen_flags: <defaults>
</compile_context>

<pallas_src>
import math

import jax
import jax.numpy as jnp
from jax.experimental import pallas as pl
from jax.experimental.pallas import tpu as pltpu


def _round_up(x, m):
    return ((x + m - 1) // m) * m


def classifier_head_kernel(x_ref, w1_ref, b1_ref, w2_ref, b2_ref, out_ref):
    """Fused classifier head on one batch tile.

    x_ref   : [TB, H]   CLS-token activations (bf16 preferred, VMEM)
    w1_ref  : [H, H]    first Linear weight, x @ W layout (bf16)
    b1_ref  : [1, H]    first Linear bias (f32)
    w2_ref  : [H, Lp]   second Linear weight, x @ W layout, lane-padded (bf16)
    b2_ref  : [1, Lp]   second Linear bias, lane-padded (f32)
    out_ref : [TB, Lp]  logits (f32, lane-dense)
    """
    x = x_ref[...]
    if x.dtype != jnp.bfloat16:          # no-op when the encoder already emits bf16
        x = x.astype(jnp.bfloat16)

    # Linear(H, H) + bias + ReLU   (bf16 MXU matmul, f32 accumulation)
    h = jnp.dot(x, w1_ref[...], preferred_element_type=jnp.float32)
    h = jnp.maximum(h + b1_ref[...], 0.0)

    # Dropout -> identity at inference.

    # Linear(H, L) + bias (lane-padded columns are exactly zero; sliced off outside)
    logits = jnp.dot(h.astype(jnp.bfloat16), w2_ref[...],
                     preferred_element_type=jnp.float32)
    out_ref[...] = (logits + b2_ref[...]).astype(out_ref.dtype)


def prepare_classifier_params(w1_torch, b1, w2_torch, b2, lane=128):
    """One-time weight preparation (run at init, NOT inside the jitted forward).

    Takes PyTorch-layout Linear params (weight [out, in], bias [out]) and returns
    x@W-layout bf16 weights and [1, .] f32 biases with num_labels lane-padded to
    a multiple of `lane` so the kernel's output stores are unmasked full-lane vst.
    """
    H = w1_torch.shape[1]
    L = w2_torch.shape[0]
    L_pad = _round_up(L, lane)
    w1 = jnp.asarray(w1_torch).T.astype(jnp.bfloat16)    # [H, H]
    w2 = jnp.asarray(w2_torch).T.astype(jnp.bfloat16)    # [H, L]
    b1 = jnp.asarray(b1, jnp.float32).reshape(1, H)
    b2 = jnp.asarray(b2, jnp.float32).reshape(1, L)
    if L_pad != L:
        w2 = jnp.pad(w2, ((0, 0), (0, L_pad - L)))
        b2 = jnp.pad(b2, ((0, 0), (0, L_pad - L)))
    return w1, b1, w2, b2


def classifier_head(sequence_output, w1, b1, w2, b2, num_labels, *, tile_b=256):
    """sequence_output: [B, S, H] (bf16 or f32); params from prepare_classifier_params.

    tile_b: 256 fills the 256-wide MXU on v6e / v7x; use 128 on v5e (128-wide MXU).
    """
    B, S, H = sequence_output.shape
    L = num_labels
    L_pad = w2.shape[1]

    # Sublane granularity for the activation dtype (f32 -> 8, bf16 -> 16, int8 -> 32).
    sub = {4: 8, 2: 16, 1: 32}.get(sequence_output.dtype.itemsize, 8)

    # Balanced batch tiles: never split a small batch artificially (each extra
    # grid step / TC re-fetches the resident weights), never leave a nearly
    # empty trailing tile when B falls between tile multiples.
    n_tiles = max(1, pl.cdiv(B, tile_b))
    tb = _round_up(pl.cdiv(B, n_tiles), sub)
    B_pad = n_tiles * tb

    if B_pad == B and (H % 128 == 0 or S == 1):
        # Fast path: zero wrapper copies.  [B, S, H] viewed as [B, S*H] (free,
        # contiguous reshape); the CLS token is columns 0:H of each row, so a
        # (tb, H) block at block index (i, 0) DMAs exactly the CLS activations.
        x = sequence_output.reshape(B, S * H)
    else:
        # Fallback: slice the CLS slab and pad only the small [B, H] array
        # (never the full [B, S, H] tensor).
        x = sequence_output[:, 0, :]
        if B_pad != B:
            x = jnp.pad(x, ((0, B_pad - B), (0, 0)))

    x_bytes = B_pad * H * sequence_output.dtype.itemsize
    cost = pl.CostEstimate(
        flops=2 * B_pad * H * (H + L_pad),
        transcendentals=0,
        bytes_accessed=(x_bytes
                        + (H * H + H * L_pad) * 2      # bf16 weights
                        + (H + L_pad) * 4              # f32 biases
                        + B_pad * L_pad * 4),          # f32 logits out
    )

    sem = ("parallel",) if n_tiles > 1 else ("arbitrary",)

    def build_and_call(weight_mode):
        wkw = {} if weight_mode is None else {"pipeline_mode": weight_mode}
        return pl.pallas_call(
            classifier_head_kernel,
            out_shape=jax.ShapeDtypeStruct((B_pad, L_pad), jnp.float32),
            grid_spec=pltpu.PrefetchScalarGridSpec(
                num_scalar_prefetch=0,
                grid=(n_tiles,),
                in_specs=[
                    pl.BlockSpec((tb, H), lambda i: (i, 0)),            # CLS rows (streamed)
                    pl.BlockSpec((H, H), lambda i: (0, 0), **wkw),      # w1 (resident)
                    pl.BlockSpec((1, H), lambda i: (0, 0), **wkw),      # b1
                    pl.BlockSpec((H, L_pad), lambda i: (0, 0), **wkw),  # w2 (resident)
                    pl.BlockSpec((1, L_pad), lambda i: (0, 0), **wkw),  # b2
                ],
                out_specs=pl.BlockSpec((tb, L_pad), lambda i: (i, 0)),
            ),
            compiler_params=pltpu.CompilerParams(dimension_semantics=sem),
            cost_estimate=cost,
        )(x, w1, b1, w2, b2)

    try:
        # Grid-invariant weights need only a single VMEM buffer: saves
        # ~H*(H+L_pad)*2 bytes of VMEM (matters under v7x's 64 MiB budget).
        out = build_and_call(pl.Buffered(1))
    except Exception:
        # pipeline_mode not supported on this JAX version -> default double-buffering.
        out = build_and_call(None)

    return out[:B, :L]


def xavier_uniform(key, shape, gain):
    # PyTorch nn.init.xavier_uniform_: U(-a, a), a = gain * sqrt(6 / (fan_in + fan_out))
    fan_out, fan_in = shape  # PyTorch Linear weight is [out_features, in_features]
    a = gain * math.sqrt(6.0 / (fan_in + fan_out))
    return jax.random.uniform(key, shape, jnp.float32, minval=-a, maxval=a)


if __name__ == "__main__":
    # Small synthetic config consistent with the module's forward.
    B, S, H, L = 16, 8, 256, 5   # batch, seq_len, hidden_size, num_labels

    key = jax.random.PRNGKey(0)
    k_seq, k_w1, k_w2 = jax.random.split(key, 3)

    # Synthetic encoder output (stands in for klue_roberta(...)[0]); a bf16
    # encoder emits bf16 activations, so they go straight into the kernel
    # with no wrapper-side cast.
    sequence_output = jax.random.normal(k_seq, (B, S, H), jnp.float32).astype(jnp.bfloat16)

    # Deterministic classifier init matching weight_init:
    #   xavier_uniform_(weight, gain=calculate_gain('relu')=sqrt(2)), zeros_(bias)
    gain = math.sqrt(2.0)
    w1_torch = xavier_uniform(k_w1, (H, H), gain)   # [out, in]
    b1_torch = jnp.zeros((H,), jnp.float32)
    w2_torch = xavier_uniform(k_w2, (L, H), gain)   # [out, in]
    b2_torch = jnp.zeros((L,), jnp.float32)

    # One-time weight prep: transpose to x@W layout, cast to bf16, lane-pad labels.
    w1, b1, w2, b2 = prepare_classifier_params(w1_torch, b1_torch, w2_torch, b2_torch)

    logits = classifier_head(sequence_output, w1, b1, w2, b2, num_labels=L)
    logits = jax.block_until_ready(logits)

    # Pure-JAX reference with the same bf16-weight / f32-accumulate arithmetic.
    x_cls = sequence_output[:, 0, :]
    h_ref = jnp.dot(x_cls, w1, preferred_element_type=jnp.float32) + b1
    h_ref = jnp.maximum(h_ref, 0.0)
    ref = (jnp.dot(h_ref.astype(jnp.bfloat16), w2,
                   preferred_element_type=jnp.float32) + b2)[:, :L]

    assert logits.shape == (B, L)
    assert jnp.allclose(logits, ref, atol=1e-2, rtol=1e-2), "mismatch vs JAX reference"

    print("KERNEL_OK")
</pallas_src>

<mosaic_0001>
module attributes {stable_mosaic.version = 11 : i64} {
  func.func @classifier_head_kernel(%arg0: i32, %arg1: memref<16x256xbf16, #tpu.memory_space<vmem>>, %arg2: memref<256x256xbf16, #tpu.memory_space<vmem>>, %arg3: memref<1x256xf32, #tpu.memory_space<vmem>>, %arg4: memref<256x128xbf16, #tpu.memory_space<vmem>>, %arg5: memref<1x128xf32, #tpu.memory_space<vmem>>, %arg6: memref<16x128xf32, #tpu.memory_space<vmem>>) attributes {dimension_semantics = [#tpu.dimension_semantics<arbitrary>], iteration_bounds = array<i64: 1>, scalar_prefetch = 0 : i64, scratch_operands = 0 : i64, tpu.core_type = #tpu.core_type<tc>, window_params = [{transform_indices = @transform_0, window_bounds = array<i64: 16, 256>}, {pipeline_mode = #tpu.pipeline_mode<synchronous>, transform_indices = @transform_1, window_bounds = array<i64: 256, 256>}, {pipeline_mode = #tpu.pipeline_mode<synchronous>, transform_indices = @transform_2, window_bounds = array<i64: 1, 256>}, {pipeline_mode = #tpu.pipeline_mode<synchronous>, transform_indices = @transform_3, window_bounds = array<i64: 256, 128>}, {pipeline_mode = #tpu.pipeline_mode<synchronous>, transform_indices = @transform_4, window_bounds = array<i64: 1, 128>}, {transform_indices = @transform_5, window_bounds = array<i64: 16, 128>}]} {
    %c0 = arith.constant 0 : index
    %c0_0 = arith.constant 0 : index
    %0 = vector.load %arg1[%c0, %c0_0] : memref<16x256xbf16, #tpu.memory_space<vmem>>, vector<16x256xbf16>
    %c0_1 = arith.constant 0 : index
    %c0_2 = arith.constant 0 : index
    %1 = vector.load %arg2[%c0_1, %c0_2] : memref<256x256xbf16, #tpu.memory_space<vmem>>, vector<256x256xbf16>
    %cst = arith.constant dense<0.000000e+00> : vector<16x256xf32>
    %2 = tpu.matmul %0, %1, %cst {dimension_numbers = #tpu.dot_dimension_numbers<[1], [0], [0], [1], [0, 0, 1, 1], [], []>} : vector<16x256xbf16>, vector<256x256xbf16>, vector<16x256xf32> -> vector<16x256xf32>
    %c0_3 = arith.constant 0 : index
    %c0_4 = arith.constant 0 : index
    %3 = vector.load %arg3[%c0_3, %c0_4] : memref<1x256xf32, #tpu.memory_space<vmem>>, vector<1x256xf32>
    %4 = vector.broadcast %3 : vector<1x256xf32> to vector<16x256xf32>
    %5 = arith.addf %2, %4 : vector<16x256xf32>
    %cst_5 = arith.constant 0.000000e+00 : f32
    %6 = vector.broadcast %cst_5 : f32 to vector<16x256xf32>
    %7 = arith.maximumf %5, %6 : vector<16x256xf32>
    %8 = arith.truncf %7 : vector<16x256xf32> to vector<16x256xbf16>
    %c0_6 = arith.constant 0 : index
    %c0_7 = arith.constant 0 : index
    %9 = vector.load %arg4[%c0_6, %c0_7] : memref<256x128xbf16, #tpu.memory_space<vmem>>, vector<256x128xbf16>
    %cst_8 = arith.constant dense<0.000000e+00> : vector<16x128xf32>
    %10 = tpu.matmul %8, %9, %cst_8 {dimension_numbers = #tpu.dot_dimension_numbers<[1], [0], [0], [1], [0, 0, 1, 1], [], []>} : vector<16x256xbf16>, vector<256x128xbf16>, vector<16x128xf32> -> vector<16x128xf32>
    %c0_9 = arith.constant 0 : index
    %c0_10 = arith.constant 0 : index
    %11 = vector.load %arg5[%c0_9, %c0_10] : memref<1x128xf32, #tpu.memory_space<vmem>>, vector<1x128xf32>
    %12 = vector.broadcast %11 : vector<1x128xf32> to vector<16x128xf32>
    %13 = arith.addf %10, %12 : vector<16x128xf32>
    %c0_11 = arith.constant 0 : index
    %c0_12 = arith.constant 0 : index
    %14 = vector.load %arg6[%c0_11, %c0_12] : memref<16x128xf32, #tpu.memory_space<vmem>>, vector<16x128xf32>
    tpu.vector_store %arg6[%c0_11, %c0_12], %13 {strides = array<i32>} : memref<16x128xf32, #tpu.memory_space<vmem>>, vector<16x128xf32>,
    return
  }
  func.func @transform_0(%arg0: i32) -> (i32, i32) {
    %c0_i32 = arith.constant 0 : i32
    %c0_i32_0 = arith.constant 0 : i32
    return %arg0, %c0_i32 : i32, i32
  }
  func.func @transform_1(%arg0: i32) -> (i32, i32) {
    %c0_i32 = arith.constant 0 : i32
    %c0_i32_0 = arith.constant 0 : i32
    %c0_i32_1 = arith.constant 0 : i32
    return %c0_i32, %c0_i32_0 : i32, i32
  }
  func.func @transform_2(%arg0: i32) -> (i32, i32) {
    %c0_i32 = arith.constant 0 : i32
    %c0_i32_0 = arith.constant 0 : i32
    %c0_i32_1 = arith.constant 0 : i32
    return %c0_i32, %c0_i32_0 : i32, i32
  }
  func.func @transform_3(%arg0: i32) -> (i32, i32) {
    %c0_i32 = arith.constant 0 : i32
    %c0_i32_0 = arith.constant 0 : i32
    %c0_i32_1 = arith.constant 0 : i32
    return %c0_i32, %c0_i32_0 : i32, i32
  }
  func.func @transform_4(%arg0: i32) -> (i32, i32) {
    %c0_i32 = arith.constant 0 : i32
    %c0_i32_0 = arith.constant 0 : i32
    %c0_i32_1 = arith.constant 0 : i32
    return %c0_i32, %c0_i32_0 : i32, i32
  }
  func.func @transform_5(%arg0: i32) -> (i32, i32) {
    %c0_i32 = arith.constant 0 : i32
    %c0_i32_0 = arith.constant 0 : i32
    return %arg0, %c0_i32 : i32, i32
  }
}

module attributes {stable_mosaic.version = 11 : i64} {
  func.func @classifier_head_kernel(%arg0: i32, %arg1: memref<16x256xbf16, #tpu.memory_space<vmem>>, %arg2: memref<256x256xbf16, #tpu.memory_space<vmem>>, %arg3: memref<1x256xf32, #tpu.memory_space<vmem>>, %arg4: memref<256x128xbf16, #tpu.memory_space<vmem>>, %arg5: memref<1x128xf32, #tpu.memory_space<vmem>>, %arg6: memref<16x128xf32, #tpu.memory_space<vmem>>) attributes {dimension_semantics = [#tpu.dimension_semantics<arbitrary>], iteration_bounds = array<i64: 1>, scalar_prefetch = 0 : i64, scratch_operands = 0 : i64, tpu.core_type = #tpu.core_type<tc>, window_params = [{transform_indices = @transform_0, window_bounds = array<i64: 16, 256>}, {pipeline_mode = #tpu.pipeline_mode<synchronous>, transform_indices = @transform_1, window_bounds = array<i64: 256, 256>}, {pipeline_mode = #tpu.pipeline_mode<synchronous>, transform_indices = @transform_2, window_bounds = array<i64: 1, 256>}, {pipeline_mode = #tpu.pipeline_mode<synchronous>, transform_indices = @transform_3, window_bounds = array<i64: 256, 128>}, {pipeline_mode = #tpu.pipeline_mode<synchronous>, transform_indices = @transform_4, window_bounds = array<i64: 1, 128>}, {transform_indices = @transform_5, window_bounds = array<i64: 16, 128>}]} {
    %c0 = arith.constant 0 : index
    %c0_0 = arith.constant 0 : index
    %0 = vector.load %arg1[%c0, %c0_0] : memref<16x256xbf16, #tpu.memory_space<vmem>>, vector<16x256xbf16>
    %c0_1 = arith.constant 0 : index
    %c0_2 = arith.constant 0 : index
    %1 = vector.load %arg2[%c0_1, %c0_2] : memref<256x256xbf16, #tpu.memory_space<vmem>>, vector<256x256xbf16>
    %cst = arith.constant dense<0.000000e+00> : vector<16x256xf32>
    %2 = tpu.matmul %0, %1, %cst {dimension_numbers = #tpu.dot_dimension_numbers<[1], [0], [0], [1], [0, 0, 1, 1], [], []>} : vector<16x256xbf16>, vector<256x256xbf16>, vector<16x256xf32> -> vector<16x256xf32>
    %c0_3 = arith.constant 0 : index
    %c0_4 = arith.constant 0 : index
    %3 = vector.load %arg3[%c0_3, %c0_4] : memref<1x256xf32, #tpu.memory_space<vmem>>, vector<1x256xf32>
    %4 = vector.broadcast %3 : vector<1x256xf32> to vector<16x256xf32>
    %5 = arith.addf %2, %4 : vector<16x256xf32>
    %cst_5 = arith.constant 0.000000e+00 : f32
    %6 = vector.broadcast %cst_5 : f32 to vector<16x256xf32>
    %7 = arith.maximumf %5, %6 : vector<16x256xf32>
    %8 = arith.truncf %7 : vector<16x256xf32> to vector<16x256xbf16>
    %c0_6 = arith.constant 0 : index
    %c0_7 = arith.constant 0 : index
    %9 = vector.load %arg4[%c0_6, %c0_7] : memref<256x128xbf16, #tpu.memory_space<vmem>>, vector<256x128xbf16>
    %cst_8 = arith.constant dense<0.000000e+00> : vector<16x128xf32>
    %10 = tpu.matmul %8, %9, %cst_8 {dimension_numbers = #tpu.dot_dimension_numbers<[1], [0], [0], [1], [0, 0, 1, 1], [], []>} : vector<16x256xbf16>, vector<256x128xbf16>, vector<16x128xf32> -> vector<16x128xf32>
    %c0_9 = arith.constant 0 : index
    %c0_10 = arith.constant 0 : index
    %11 = vector.load %arg5[%c0_9, %c0_10] : memref<1x128xf32, #tpu.memory_space<vmem>>, vector<1x128xf32>
    %12 = vector.broadcast %11 : vector<1x128xf32> to vector<16x128xf32>
    %13 = arith.addf %10, %12 : vector<16x128xf32>
    %c0_11 = arith.constant 0 : index
    %c0_12 = arith.constant 0 : index
    %14 = vector.load %arg6[%c0_11, %c0_12] : memref<16x128xf32, #tpu.memory_space<vmem>>, vector<16x128xf32>
    tpu.vector_store %arg6[%c0_11, %c0_12], %13 {strides = array<i32>} : memref<16x128xf32, #tpu.memory_space<vmem>>, vector<16x128xf32>,
    return
  }
  func.func @transform_0(%arg0: i32) -> (i32, i32) {
    %c0_i32 = arith.constant 0 : i32
    %c0_i32_0 = arith.constant 0 : i32
    return %arg0, %c0_i32 : i32, i32
  }
  func.func @transform_1(%arg0: i32) -> (i32, i32) {
    %c0_i32 = arith.constant 0 : i32
    %c0_i32_0 = arith.constant 0 : i32
    %c0_i32_1 = arith.constant 0 : i32
    return %c0_i32, %c0_i32_0 : i32, i32
  }
  func.func @transform_2(%arg0: i32) -> (i32, i32) {
    %c0_i32 = arith.constant 0 : i32
    %c0_i32_0 = arith.constant 0 : i32
    %c0_i32_1 = arith.constant 0 : i32
    return %c0_i32, %c0_i32_0 : i32, i32
  }
  func.func @transform_3(%arg0: i32) -> (i32, i32) {
    %c0_i32 = arith.constant 0 : i32
    %c0_i32_0 = arith.constant 0 : i32
    %c0_i32_1 = arith.constant 0 : i32
    return %c0_i32, %c0_i32_0 : i32, i32
  }
  func.func @transform_4(%arg0: i32) -> (i32, i32) {
    %c0_i32 = arith.constant 0 : i32
    %c0_i32_0 = arith.constant 0 : i32
    %c0_i32_1 = arith.constant 0 : i32
    return %c0_i32, %c0_i32_0 : i32, i32
  }
  func.func @transform_5(%arg0: i32) -> (i32, i32) {
    %c0_i32 = arith.constant 0 : i32
    %c0_i32_0 = arith.constant 0 : i32
    return %arg0, %c0_i32 : i32, i32
  }
}

</mosaic_0001>

<bundles_post_ra>
// kernel: tpu_custom_call.1
= control target key start
LH: loop header
LB: loop body
LE: loop exit
PB: predicated region body
PF: predicated region fallthrough
CT: control target
= control target key end

     0   :  { %10 = vsyncpa [#allocation3], 0  ;;  %s824_s0 = inlined_call_operand.hbm [shape: bf16[16,2048], index: 0, kind: input, shape index: {}]   ;;  %s825_s1 = inlined_call_operand.hbm [shape: bf16[256,256], index: 1, kind: input, shape index: {}]   ;;  %s826_s2 = inlined_call_operand.vmem [shape: f32[1,256], index: 2, kind: input, shape index: {}]   ;;  %s827_s3 = inlined_call_operand.hbm [shape: bf16[256,128], index: 3, kind: input, shape index: {}]   ;;  %s828_s4 = inlined_call_operand.vmem [shape: f32[1,128], index: 4, kind: input, shape index: {}]   ;;  %s829_s5 = inlined_call_operand.hbm [shape: f32[16,128], index: 5, kind: output, shape index: {}]  }
   0x1   :  { %11 = vsyncpa [#allocation6], 0 }
   0x2   :  { %12 = vsyncpa [#allocation4], 0  ;;  %s759_s18 = smov [#allocation5]   ;;  %s760_s20 = smov [#allocation2]  }
   0x3   :  { %s30_s19 = sshll.u32 %s759_s18, 4  ;;  %s18_s21 = sshll.u32 %s760_s20, 4  ;;  %s31_s19 = int_to_ptr.vmem [resolvable:$true] %s30_s19  ;;  %s19_s21 = int_to_ptr.vmem [resolvable:$true] %s18_s21 }
   0x4   :  { %s681_s22 = scalar_lea.vmem %s31_s19, 4096  ;;  %p686_p1 = scmp.lt.s32.totalorder %s31_s19, %s31_s19 }
   0x5   :  { %p682_p0 = scmp.ne.s32.totalorder %s31_s19, %s681_s22  ;;  %p687_p2 = scmp.lt.s32.totalorder %s681_s22, %s681_s22 }
   0x7   :  { %p688_p3 = por %p687_p2, %p686_p1 }
   0x9   :  { %p689_p4 = pnand %p688_p3, %p682_p0 }
   0xb   :  { %692 = shalt.err (!%p689_p4)
}
   0xc   :  { %s761_s23 = smov 128   ;;  %s762_s24 = smov 8  }
   0xd   :  { %36 = dma.hbm_to_vmem [thread:$0]  %s825_s1, 4096, %s31_s19, [#allocation6], %s761_s23, %s761_s23, %s762_s24  }
   0xe   :  { %s701_s27 = scalar_lea.vmem %s19_s21, 256  ;;  %p706_p6 = scmp.lt.s32.totalorder %s19_s21, %s19_s21 }
   0xf   :  { %p702_p5 = scmp.ne.s32.totalorder %s19_s21, %s701_s27  ;;  %p707_p7 = scmp.lt.s32.totalorder %s701_s27, %s701_s27 }
  0x11   :  { %p708_p8 = por %p707_p7, %p706_p6 }
  0x13   :  { %p709_p9 = pnand %p708_p8, %p702_p5 }
  0x15   :  { %712 = shalt.err (!%p709_p9)
}
  0x16   :  { %s763_s28 = smov 1024   ;;  %s764_s6 = smov [#allocation7]  }
  0x17   :  { %24 = dma.hbm_to_vmem [thread:$0]  %s824_s0, 256, %s19_s21, [#allocation3], %s763_s28, %s761_s23, %s762_s24  }
  0x18   :  { %s44_s7 = sshll.u32 %s764_s6, 4  ;;  %s45_s7 = int_to_ptr.vmem [resolvable:$true] %s44_s7 }
  0x19   :  { %s721_s8 = scalar_lea.vmem %s45_s7, 2048  ;;  %p726_p11 = scmp.lt.s32.totalorder %s45_s7, %s45_s7 }
  0x1a   :  { %p722_p10 = scmp.ne.s32.totalorder %s45_s7, %s721_s8  ;;  %p727_p12 = scmp.lt.s32.totalorder %s721_s8, %s721_s8 }
  0x1c   :  { %p728_p13 = por %p727_p12, %p726_p11 }
  0x1e   :  { %p729_p0 = pnand %p728_p13, %p722_p10 }
  0x20   :  { %732 = shalt.err (!%p729_p0)
}
  0x21   :  { %s765_s1 = smov 64   ;;  %s766_s9 = smov 4  }
  0x22   :  { %50 = dma.hbm_to_vmem [thread:$0]  %s827_s3, 2048, %s45_s7, [#allocation6], %s765_s1, %s765_s1, %s766_s9  }
  0x23   :  { %753 = dma.done.wait [#allocation3], 256  }
  0x24   :  { %754 = vsyncadd [#allocation3], 4294967040 }
  0x25   :  { %755 = dma.done.wait [#allocation6], 6144  }
  0x26   :  { %756 = vsyncadd [#allocation6], 4294961152  ;;  %v606_v0 = vld [vmem:[#allocation5 + $0x74] ss:$8 sps:$4 sm:$0xff]   ;;  %v608_v1 = vld [vmem:[#allocation5 + $0x70] ss:$8 sps:$4 sm:$0xff]   ;;  %v99_v50 = vlaneseq }
  0x27   :  { %279 = vmatprep.subr.bf16.mxu0 %v606_v0  ;;  %v609_v2 = vld [vmem:[#allocation5 + $0x64] ss:$8 sps:$4 sm:$0xff]   ;;  %v611_v3 = vld [vmem:[#allocation5 + $0x60] ss:$8 sps:$4 sm:$0xff]   ;;  %v612_v4 = vld [vmem:[#allocation5 + $0x54] ss:$8 sps:$4 sm:$0xff]  }
  0x28   :  { %280 = vmatpush1.bf16.msra.mxu0 %v608_v1  ;;  %v614_v5 = vld [vmem:[#allocation5 + $0x50] ss:$8 sps:$4 sm:$0xff]   ;;  %v615_v6 = vld [vmem:[#allocation5 + $0x44] ss:$8 sps:$4 sm:$0xff]   ;;  %v617_v7 = vld [vmem:[#allocation5 + $0x40] ss:$8 sps:$4 sm:$0xff]  }
  0x29   :  { %281 = vmatprep.subr.bf16.mxu0 %v609_v2  ;;  %v618_v8 = vld [vmem:[#allocation5 + $0x34] ss:$8 sps:$4 sm:$0xff]   ;;  %v620_v9 = vld [vmem:[#allocation5 + $0x30] ss:$8 sps:$4 sm:$0xff]   ;;  %v621_v10 = vld [vmem:[#allocation5 + $0x24] ss:$8 sps:$4 sm:$0xff]  }
  0x2a   :  { %v623_v11 = vld [vmem:[#allocation5 + $0x20] ss:$8 sps:$4 sm:$0xff]   ;;  %v624_v12 = vld [vmem:[#allocation5 + $0x14] ss:$8 sps:$4 sm:$0xff]   ;;  %v626_v13 = vld [vmem:[#allocation5 + $0x10] ss:$8 sps:$4 sm:$0xff]  }
  0x2b   :  { %v627_v14 = vld [vmem:[#allocation5 + $0x4] ss:$8 sps:$4 sm:$0xff]   ;;  %v656_v15 = vld [vmem:[#allocation2 + $0x4] ss:$8 sps:$4 sm:$0xff]   ;;  %v629_v18 = vld [vmem:[#allocation5] ss:$8 sps:$4 sm:$0xff]  }
  0x2c   :  { %282 = vmatpush1.bf16.msra.mxu0 %v611_v3  ;;  %v657_v16 = vld [vmem:[#allocation7 + $0x78] sm:$0xff]   ;;  %311 = vmatprep.mubr.bf16.mxu0 %v656_v15  ;;  %v659_v19 = vld [vmem:[#allocation7 + $0x70] sm:$0xff]   ;;  %v661_v21 = vld [vmem:[#allocation7 + $0x68] sm:$0xff]   ;;  %v100_v51 = vshrl.u32 %v99_v50, 7  ;;  %s767_s13 = smov [#allocation8]  }
  0x2d   :  { %283 = vmatprep.subr.bf16.mxu0 %v612_v4  ;;  %v658_v17 = vld [vmem:[#allocation7 + $0x38] sm:$0xff]   ;;  %575 = vmatprep.subr.bf16.mxu1 %v657_v16  ;;  %v660_v20 = vld [vmem:[#allocation7 + $0x30] sm:$0xff]   ;;  %v662_v24 = vld [vmem:[#allocation7 + $0x28] sm:$0xff]   ;;  %s511_s14 = sshll.u32 %s767_s13, 4  ;;  %s512_s14 = int_to_ptr.vmem [resolvable:$true] %s511_s14 }
  0x2e   :  { %576 = vmatpush3.bf16.msra.mxu1 %v658_v17  ;;  %v630_v22 = vld [vmem:[#allocation5 + $0xf4] ss:$8 sps:$4 sm:$0xff]   ;;  %v632_v23 = vld [vmem:[#allocation5 + $0xf0] ss:$8 sps:$4 sm:$0xff]   ;;  %v663_v25 = vld [vmem:[#allocation7 + $0x60] sm:$0xff]   ;;  %v105_v52 = vsub.s32 1, %v100_v51  ;;  %p738_p2 = scmp.lt.s32.totalorder %s512_s14, %s512_s14 }
  0x2f   :  { %577 = vmatprep.subr.bf16.mxu1 %v659_v19  ;;  %v633_v26 = vld [vmem:[#allocation5 + $0xe4] ss:$8 sps:$4 sm:$0xff]   ;;  %v635_v28 = vld [vmem:[#allocation5 + $0xe0] ss:$8 sps:$4 sm:$0xff]   ;;  %v665_v29 = vld [vmem:[#allocation7 + $0x58] sm:$0xff]   ;;  %v101_v53 = vsub.s32 0, %v100_v51 }
  0x30   :  { %284 = vmatpush1.bf16.msra.mxu0 %v614_v5  ;;  %v664_v27 = vld [vmem:[#allocation7 + $0x20] sm:$0xff]   ;;  %v636_v30 = vld [vmem:[#allocation5 + $0xd4] ss:$8 sps:$4 sm:$0xff]   ;;  %v638_v32 = vld [vmem:[#allocation5 + $0xd0] ss:$8 sps:$4 sm:$0xff]   ;;  %s733_s15 = scalar_lea.vmem %s512_s14, 256 }
  0x31   :  { %285 = vmatprep.subr.bf16.mxu0 %v615_v6  ;;  %v666_v31 = vld [vmem:[#allocation7 + $0x18] sm:$0xff]   ;;  %v639_v33 = vld [vmem:[#allocation5 + $0xc4] ss:$8 sps:$4 sm:$0xff]   ;;  %v641_v34 = vld [vmem:[#allocation5 + $0xc0] ss:$8 sps:$4 sm:$0xff]   ;;  %p734_p1 = scmp.ne.s32.totalorder %s512_s14, %s733_s15  ;;  %p739_p3 = scmp.lt.s32.totalorder %s733_s15, %s733_s15 }
  0x32   :  { %578 = vmatpush3.bf16.msra.mxu1 %v660_v20  ;;  %v642_v35 = vld [vmem:[#allocation5 + $0xb4] ss:$8 sps:$4 sm:$0xff]   ;;  %v644_v36 = vld [vmem:[#allocation5 + $0xb0] ss:$8 sps:$4 sm:$0xff]   ;;  %v645_v37 = vld [vmem:[#allocation5 + $0xa4] ss:$8 sps:$4 sm:$0xff]  }
  0x33   :  { %579 = vmatprep.subr.bf16.mxu1 %v661_v21  ;;  %v647_v38 = vld [vmem:[#allocation5 + $0xa0] ss:$8 sps:$4 sm:$0xff]   ;;  %v648_v39 = vld [vmem:[#allocation5 + $0x94] ss:$8 sps:$4 sm:$0xff]   ;;  %v650_v40 = vld [vmem:[#allocation5 + $0x90] ss:$8 sps:$4 sm:$0xff]   ;;  %p740_p4 = por %p739_p3, %p738_p2 }
  0x34   :  { %286 = vmatpush1.bf16.msra.mxu0 %v617_v7  ;;  %v651_v41 = vld [vmem:[#allocation5 + $0x84] ss:$8 sps:$4 sm:$0xff]   ;;  %v653_v42 = vld [vmem:[#allocation5 + $0x80] ss:$8 sps:$4 sm:$0xff]   ;;  %v654_v43 = vld [vmem:[#allocation2] ss:$8 sps:$4 sm:$0xff]  }
  0x35   :  { %287 = vmatprep.subr.bf16.mxu0 %v618_v8  ;;  %v667_v44 = vld [vmem:[#allocation7 + $0x50] sm:$0xff]   ;;  %v669_v46 = vld [vmem:[#allocation7 + $0x48] sm:$0xff]   ;;  %v671_v48 = vld [vmem:[#allocation7 + $0x40] sm:$0xff]   ;;  %p741_p5 = pnand %p740_p4, %p734_p1 }
  0x36   :  { %580 = vmatpush3.bf16.msra.mxu1 %v662_v24  ;;  %v668_v45 = vld [vmem:[#allocation7 + $0x10] sm:$0xff]   ;;  %v670_v47 = vld [vmem:[#allocation7 + $0x8] sm:$0xff]   ;;  %v672_v49 = vld [vmem:[#allocation7] sm:$0xff]  }
  0x37   :  { %581 = vmatprep.subr.bf16.mxu1 %v663_v25  ;;  %v97_v54 = vld [vmem:[%s826_s2] sm:$0x3] }
  0x38   :  { %288 = vmatpush1.bf16.msra.mxu0 %v620_v9  ;;  %v106_v56 = vrot.slane %v97_v54, %v105_v52  ;;  %v102_v57 = vrot.slane %v97_v54, %v101_v53  ;;  %v558_v8 = vld [vmem:[%s828_s4] ss:$0 sm:$0xff] }
  0x39   :  { %289 = vmatprep.subr.bf16.mxu0 %v621_v10 }
  0x3a   :  { %582 = vmatpush3.bf16.msra.mxu1 %v664_v27 }
  0x3b   :  { %583 = vmatprep.subr.bf16.mxu1 %v665_v29 }
  0x3c   :  { %290 = vmatpush1.bf16.msra.mxu0 %v623_v11 }
  0x3d   :  { %291 = vmatprep.subr.bf16.mxu0 %v624_v12 }
  0x3e   :  { %584 = vmatpush3.bf16.msra.mxu1 %v666_v31 }
  0x3f   :  { %585 = vmatprep.subr.bf16.mxu1 %v667_v44 }
  0x40   :  { %292 = vmatpush1.bf16.msra.mxu0 %v626_v13 }
  0x41   :  { %293 = vmatprep.subr.bf16.mxu0 %v627_v14 }
  0x42   :  { %586 = vmatpush3.bf16.msra.mxu1 %v668_v45 }
  0x43   :  { %587 = vmatprep.subr.bf16.mxu1 %v669_v46 }
  0x44   :  { %294 = vmatpush1.bf16.msra.mxu0 %v629_v18 }
  0x45   :  { %295 = vmatprep.subr.bf16.mxu0 %v630_v22 }
  0x46   :  { %588 = vmatpush3.bf16.msra.mxu1 %v670_v47 }
  0x47   :  { %589 = vmatprep.subr.bf16.mxu1 %v671_v48 }
  0x48   :  { %296 = vmatpush2.bf16.msra.mxu0 %v632_v23 }
  0x49   :  { %297 = vmatprep.subr.bf16.mxu0 %v633_v26 }
  0x4a   :  { %590 = vmatpush3.bf16.msra.mxu1 %v672_v49 }
  0x4c   :  { %298 = vmatpush2.bf16.msra.mxu0 %v635_v28 }
  0x4d   :  { %299 = vmatprep.subr.bf16.mxu0 %v636_v30 }
  0x50   :  { %300 = vmatpush2.bf16.msra.mxu0 %v638_v32 }
  0x51   :  { %301 = vmatprep.subr.bf16.mxu0 %v639_v33 }
  0x54   :  { %302 = vmatpush2.bf16.msra.mxu0 %v641_v34 }
  0x55   :  { %303 = vmatprep.subr.bf16.mxu0 %v642_v35 }
  0x58   :  { %304 = vmatpush2.bf16.msra.mxu0 %v644_v36 }
  0x59   :  { %305 = vmatprep.subr.bf16.mxu0 %v645_v37 }
  0x5c   :  { %306 = vmatpush2.bf16.msra.mxu0 %v647_v38 }
  0x5d   :  { %307 = vmatprep.subr.bf16.mxu0 %v648_v39 }
  0x60   :  { %308 = vmatpush2.bf16.msra.mxu0 %v650_v40 }
  0x61   :  { %309 = vmatprep.subr.bf16.mxu0 %v651_v41 }
  0x64   :  { %310 = vmatpush2.bf16.msra.mxu0 %v653_v42 }
  0x67   :  { %312 = vmatmul.mubr.bf16.vlgmr.msra.gmra.mxu0 %v654_v43 }
 0x127   :  { %v313_v55 = vpop.f32.mrf.mxu0 }
 0x128   :  { %v314_v62 = vadd.f32 %v313_v55, %v102_v57 }
 0x129   :  { %v315_v58 = vpop.f32.mrf.mxu0 }
 0x12a   :  { %v316_v60 = vadd.f32 %v315_v58, %v106_v56  ;;  %v322_v4 = vmax.f32 %v314_v62, 0.0 }
 0x12b   :  { %v317_v59 = vpop.f32.mrf.mxu0 }
 0x12c   :  { %v318_v61 = vadd.f32 %v317_v59, %v102_v57  ;;  %v323_v2 = vmax.f32 %v316_v60, 0.0 }
 0x12d   :  { %v319_v63 = vpop.f32.mrf.mxu0 }
 0x12e   :  { %v320_v0 = vadd.f32 %v319_v63, %v106_v56  ;;  %v324_v1 = vmax.f32 %v318_v61, 0.0 }
 0x130   :  { %v325_v3 = vmax.f32 %v320_v0, 0.0  ;;  %v326_v6 = vpack.c.bf16 %v324_v1, %v322_v4 }
 0x132   :  { %v327_v5 = vpack.c.bf16 %v325_v3, %v323_v2 }
 0x134   :  { %495 = vmatprep.mubr.bf16.mxu1 %v327_v5 }
 0x135   :  { %496 = vmatmul.mubr.bf16.vlgmr.msra.gmra.mxu1 %v326_v6 }
 0x1f5   :  { %v591_v7 = vpop.f32.mrf.mxu1 }
 0x1f7   :  { %v592_v9 = vpop.f32.mrf.mxu1 }
 0x1f8   :  { %v593_v10 = vadd.f32 %v592_v9, %v591_v7 }
 0x1f9   :  { %v594_v11 = vpop.f32.mrf.mxu1 }
 0x1fa   :  { %v498_v12 = vadd.f32 %v593_v10, %v558_v8 }
 0x1fb   :  { %v595_v13 = vpop.f32.mrf.mxu1 }
 0x1fc   :  { %504 = vst [vmem:[#allocation8] sm:$0xff] %v498_v12  ;;  %v596_v14 = vadd.f32 %v595_v13, %v594_v11 }
 0x1fe   :  { %v501_v15 = vadd.f32 %v596_v14, %v558_v8 }
 0x200   :  { %505 = vst [vmem:[#allocation8 + $0x8] sm:$0xff] %v501_v15 }
 0x201   :  { %744 = shalt.err (!%p741_p5)
}
 0x202   :  { %517 = dma.vmem_to_hbm [thread:$0]  %s512_s14, 256, %s829_s5, [#allocation4], %s761_s23, %s761_s23, %s762_s24  }
 0x203   :  { %757 = dma.done.wait [#allocation4], 256  }
 0x204   :  { %758 = vsyncadd [#allocation4], 4294967040 }
 0x205   :  { %521 = vsyncpa [#allocation3], 1 }
 0x206   :  { %522 = vsyncpa [#allocation6], 1 }
 0x207   :  { %523 = vsyncpa [#allocation4], 1 }

// kernel: tpu_custom_call.1
= control target key start
LH: loop header
LB: loop body
LE: loop exit
PB: predicated region body
PF: predicated region fallthrough
CT: control target
= control target key end

     0   :  { %10 = vsyncpa [#allocation3], 0  ;;  %s824_s0 = inlined_call_operand.hbm [shape: bf16[16,2048], index: 0, kind: input, shape index: {}]   ;;  %s825_s1 = inlined_call_operand.hbm [shape: bf16[256,256], index: 1, kind: input, shape index: {}]   ;;  %s826_s2 = inlined_call_operand.vmem [shape: f32[1,256], index: 2, kind: input, shape index: {}]   ;;  %s827_s3 = inlined_call_operand.hbm [shape: bf16[256,128], index: 3, kind: input, shape index: {}]   ;;  %s828_s4 = inlined_call_operand.vmem [shape: f32[1,128], index: 4, kind: input, shape index: {}]   ;;  %s829_s5 = inlined_call_operand.hbm [shape: f32[16,128], index: 5, kind: output, shape index: {}]  }
   0x1   :  { %11 = vsyncpa [#allocation6], 0 }
   0x2   :  { %12 = vsyncpa [#allocation4], 0  ;;  %s759_s18 = smov [#allocation5]   ;;  %s760_s20 = smov [#allocation2]  }
   0x3   :  { %s30_s19 = sshll.u32 %s759_s18, 4  ;;  %s18_s21 = sshll.u32 %s760_s20, 4  ;;  %s31_s19 = int_to_ptr.vmem [resolvable:$true] %s30_s19  ;;  %s19_s21 = int_to_ptr.vmem [resolvable:$true] %s18_s21 }
   0x4   :  { %s681_s22 = scalar_lea.vmem %s31_s19, 4096  ;;  %p686_p1 = scmp.lt.s32.totalorder %s31_s19, %s31_s19 }
   0x5   :  { %p682_p0 = scmp.ne.s32.totalorder %s31_s19, %s681_s22  ;;  %p687_p2 = scmp.lt.s32.totalorder %s681_s22, %s681_s22 }
   0x7   :  { %p688_p3 = por %p687_p2, %p686_p1 }
   0x9   :  { %p689_p4 = pnand %p688_p3, %p682_p0 }
   0xb   :  { %692 = shalt.err (!%p689_p4)
}
   0xc   :  { %s761_s23 = smov 128   ;;  %s762_s24 = smov 8  }
   0xd   :  { %36 = dma.hbm_to_vmem [thread:$0]  %s825_s1, 4096, %s31_s19, [#allocation6], %s761_s23, %s761_s23, %s762_s24  }
   0xe   :  { %s701_s27 = scalar_lea.vmem %s19_s21, 256  ;;  %p706_p6 = scmp.lt.s32.totalorder %s19_s21, %s19_s21 }
   0xf   :  { %p702_p5 = scmp.ne.s32.totalorder %s19_s21, %s701_s27  ;;  %p707_p7 = scmp.lt.s32.totalorder %s701_s27, %s701_s27 }
  0x11   :  { %p708_p8 = por %p707_p7, %p706_p6 }
  0x13   :  { %p709_p9 = pnand %p708_p8, %p702_p5 }
  0x15   :  { %712 = shalt.err (!%p709_p9)
}
  0x16   :  { %s763_s28 = smov 1024   ;;  %s764_s6 = smov [#allocation7]  }
  0x17   :  { %24 = dma.hbm_to_vmem [thread:$0]  %s824_s0, 256, %s19_s21, [#allocation3], %s763_s28, %s761_s23, %s762_s24  }
  0x18   :  { %s44_s7 = sshll.u32 %s764_s6, 4  ;;  %s45_s7 = int_to_ptr.vmem [resolvable:$true] %s44_s7 }
  0x19   :  { %s721_s8 = scalar_lea.vmem %s45_s7, 2048  ;;  %p726_p11 = scmp.lt.s32.totalorder %s45_s7, %s45_s7 }
  0x1a   :  { %p722_p10 = scmp.ne.s32.totalorder %s45_s7, %s721_s8  ;;  %p727_p12 = scmp.lt.s32.totalorder %s721_s8, %s721_s8 }
  0x1c   :  { %p728_p13 = por %p727_p12, %p726_p11 }
  0x1e   :  { %p729_p0 = pnand %p728_p13, %p722_p10 }
  0x20   :  { %732 = shalt.err (!%p729_p0)
}
  0x21   :  { %s765_s1 = smov 64   ;;  %s766_s9 = smov 4  }
  0x22   :  { %50 = dma.hbm_to_vmem [thread:$0]  %s827_s3, 2048, %s45_s7, [#allocation6], %s765_s1, %s765_s1, %s766_s9  }
  0x23   :  { %753 = dma.done.wait [#allocation3], 256  }
  0x24   :  { %754 = vsyncadd [#allocation3], 4294967040 }
  0x25   :  { %755 = dma.done.wait [#allocation6], 6144  }
  0x26   :  { %756 = vsyncadd [#allocation6], 4294961152  ;;  %v606_v0 = vld [vmem:[#allocation5 + $0x74] ss:$8 sps:$4 sm:$0xff]   ;;  %v608_v1 = vld [vmem:[#allocation5 + $0x70] ss:$8 sps:$4 sm:$0xff]   ;;  %v99_v50 = vlaneseq }
  0x27   :  { %279 = vmatprep.subr.bf16.mxu0 %v606_v0  ;;  %v609_v2 = vld [vmem:[#allocation5 + $0x64] ss:$8 sps:$4 sm:$0xff]   ;;  %v611_v3 = vld [vmem:[#allocation5 + $0x60] ss:$8 sps:$4 sm:$0xff]   ;;  %v612_v4 = vld [vmem:[#allocation5 + $0x54] ss:$8 sps:$4 sm:$0xff]  }
  0x28   :  { %280 = vmatpush1.bf16.msra.mxu0 %v608_v1  ;;  %v614_v5 = vld [vmem:[#allocation5 + $0x50] ss:$8 sps:$4 sm:$0xff]   ;;  %v615_v6 = vld [vmem:[#allocation5 + $0x44] ss:$8 sps:$4 sm:$0xff]   ;;  %v617_v7 = vld [vmem:[#allocation5 + $0x40] ss:$8 sps:$4 sm:$0xff]  }
  0x29   :  { %281 = vmatprep.subr.bf16.mxu0 %v609_v2  ;;  %v618_v8 = vld [vmem:[#allocation5 + $0x34] ss:$8 sps:$4 sm:$0xff]   ;;  %v620_v9 = vld [vmem:[#allocation5 + $0x30] ss:$8 sps:$4 sm:$0xff]   ;;  %v621_v10 = vld [vmem:[#allocation5 + $0x24] ss:$8 sps:$4 sm:$0xff]  }
  0x2a   :  { %v623_v11 = vld [vmem:[#allocation5 + $0x20] ss:$8 sps:$4 sm:$0xff]   ;;  %v624_v12 = vld [vmem:[#allocation5 + $0x14] ss:$8 sps:$4 sm:$0xff]   ;;  %v626_v13 = vld [vmem:[#allocation5 + $0x10] ss:$8 sps:$4 sm:$0xff]  }
  0x2b   :  { %v627_v14 = vld [vmem:[#allocation5 + $0x4] ss:$8 sps:$4 sm:$0xff]   ;;  %v656_v15 = vld [vmem:[#allocation2 + $0x4] ss:$8 sps:$4 sm:$0xff]   ;;  %v629_v18 = vld [vmem:[#allocation5] ss:$8 sps:$4 sm:$0xff]  }
  0x2c   :  { %282 = vmatpush1.bf16.msra.mxu0 %v611_v3  ;;  %v657_v16 = vld [vmem:[#allocation7 + $0x78] sm:$0xff]   ;;  %311 = vmatprep.mubr.bf16.mxu0 %v656_v15  ;;  %v659_v19 = vld [vmem:[#allocation7 + $0x70] sm:$0xff]   ;;  %v661_v21 = vld [vmem:[#allocation7 + $0x68] sm:$0xff]   ;;  %v100_v51 = vshrl.u32 %v99_v50, 7  ;;  %s767_s13 = smov [#allocation8]  }
  0x2d   :  { %283 = vmatprep.subr.bf16.mxu0 %v612_v4  ;;  %v658_v17 = vld [vmem:[#allocation7 + $0x38] sm:$0xff]   ;;  %575 = vmatprep.subr.bf16.mxu1 %v657_v16  ;;  %v660_v20 = vld [vmem:[#allocation7 + $0x30] sm:$0xff]   ;;  %v662_v24 = vld [vmem:[#allocation7 + $0x28] sm:$0xff]   ;;  %s511_s14 = sshll.u32 %s767_s13, 4  ;;  %s512_s14 = int_to_ptr.vmem [resolvable:$true] %s511_s14 }
  0x2e   :  { %576 = vmatpush3.bf16.msra.mxu1 %v658_v17  ;;  %v630_v22 = vld [vmem:[#allocation5 + $0xf4] ss:$8 sps:$4 sm:$0xff]   ;;  %v632_v23 = vld [vmem:[#allocation5 + $0xf0] ss:$8 sps:$4 sm:$0xff]   ;;  %v663_v25 = vld [vmem:[#allocation7 + $0x60] sm:$0xff]   ;;  %v105_v52 = vsub.s32 1, %v100_v51  ;;  %p738_p2 = scmp.lt.s32.totalorder %s512_s14, %s512_s14 }
  0x2f   :  { %577 = vmatprep.subr.bf16.mxu1 %v659_v19  ;;  %v633_v26 = vld [vmem:[#allocation5 + $0xe4] ss:$8 sps:$4 sm:$0xff]   ;;  %v635_v28 = vld [vmem:[#allocation5 + $0xe0] ss:$8 sps:$4 sm:$0xff]   ;;  %v665_v29 = vld [vmem:[#allocation7 + $0x58] sm:$0xff]   ;;  %v101_v53 = vsub.s32 0, %v100_v51 }
  0x30   :  { %284 = vmatpush1.bf16.msra.mxu0 %v614_v5  ;;  %v664_v27 = vld [vmem:[#allocation7 + $0x20] sm:$0xff]   ;;  %v636_v30 = vld [vmem:[#allocation5 + $0xd4] ss:$8 sps:$4 sm:$0xff]   ;;  %v638_v32 = vld [vmem:[#allocation5 + $0xd0] ss:$8 sps:$4 sm:$0xff]   ;;  %s733_s15 = scalar_lea.vmem %s512_s14, 256 }
  0x31   :  { %285 = vmatprep.subr.bf16.mxu0 %v615_v6  ;;  %v666_v31 = vld [vmem:[#allocation7 + $0x18] sm:$0xff]   ;;  %v639_v33 = vld [vmem:[#allocation5 + $0xc4] ss:$8 sps:$4 sm:$0xff]   ;;  %v641_v34 = vld [vmem:[#allocation5 + $0xc0] ss:$8 sps:$4 sm:$0xff]   ;;  %p734_p1 = scmp.ne.s32.totalorder %s512_s14, %s733_s15  ;;  %p739_p3 = scmp.lt.s32.totalorder %s733_s15, %s733_s15 }
  0x32   :  { %578 = vmatpush3.bf16.msra.mxu1 %v660_v20  ;;  %v642_v35 = vld [vmem:[#allocation5 + $0xb4] ss:$8 sps:$4 sm:$0xff]   ;;  %v644_v36 = vld [vmem:[#allocation5 + $0xb0] ss:$8 sps:$4 sm:$0xff]   ;;  %v645_v37 = vld [vmem:[#allocation5 + $0xa4] ss:$8 sps:$4 sm:$0xff]  }
  0x33   :  { %579 = vmatprep.subr.bf16.mxu1 %v661_v21  ;;  %v647_v38 = vld [vmem:[#allocation5 + $0xa0] ss:$8 sps:$4 sm:$0xff]   ;;  %v648_v39 = vld [vmem:[#allocation5 + $0x94] ss:$8 sps:$4 sm:$0xff]   ;;  %v650_v40 = vld [vmem:[#allocation5 + $0x90] ss:$8 sps:$4 sm:$0xff]   ;;  %p740_p4 = por %p739_p3, %p738_p2 }
  0x34   :  { %286 = vmatpush1.bf16.msra.mxu0 %v617_v7  ;;  %v651_v41 = vld [vmem:[#allocation5 + $0x84] ss:$8 sps:$4 sm:$0xff]   ;;  %v653_v42 = vld [vmem:[#allocation5 + $0x80] ss:$8 sps:$4 sm:$0xff]   ;;  %v654_v43 = vld [vmem:[#allocation2] ss:$8 sps:$4 sm:$0xff]  }
  0x35   :  { %287 = vmatprep.subr.bf16.mxu0 %v618_v8  ;;  %v667_v44 = vld [vmem:[#allocation7 + $0x50] sm:$0xff]   ;;  %v669_v46 = vld [vmem:[#allocation7 + $0x48] sm:$0xff]   ;;  %v671_v48 = vld [vmem:[#allocation7 + $0x40] sm:$0xff]   ;;  %p741_p5 = pnand %p740_p4, %p734_p1 }
  0x36   :  { %580 = vmatpush3.bf16.msra.mxu1 %v662_v24  ;;  %v668_v45 = vld [vmem:[#allocation7 + $0x10] sm:$0xff]   ;;  %v670_v47 = vld [vmem:[#allocation7 + $0x8] sm:$0xff]   ;;  %v672_v49 = vld [vmem:[#allocation7] sm:$0xff]  }
  0x37   :  { %581 = vmatprep.subr.bf16.mxu1 %v663_v25  ;;  %v97_v54 = vld [vmem:[%s826_s2] sm:$0x3] }
  0x38   :  { %288 = vmatpush1.bf16.msra.mxu0 %v620_v9  ;;  %v106_v56 = vrot.slane %v97_v54, %v105_v52  ;;  %v102_v57 = vrot.slane %v97_v54, %v101_v53  ;;  %v558_v8 = vld [vmem:[%s828_s4] ss:$0 sm:$0xff] }
  0x39   :  { %289 = vmatprep.subr.bf16.mxu0 %v621_v10 }
  0x3a   :  { %582 = vmatpush3.bf16.msra.mxu1 %v664_v27 }
  0x3b   :  { %583 = vmatprep.subr.bf16.mxu1 %v665_v29 }
  0x3c   :  { %290 = vmatpush1.bf16.msra.mxu0 %v623_v11 }
  0x3d   :  { %291 = vmatprep.subr.bf16.mxu0 %v624_v12 }
  0x3e   :  { %584 = vmatpush3.bf16.msra.mxu1 %v666_v31 }
  0x3f   :  { %585 = vmatprep.subr.bf16.mxu1 %v667_v44 }
  0x40   :  { %292 = vmatpush1.bf16.msra.mxu0 %v626_v13 }
  0x41   :  { %293 = vmatprep.subr.bf16.mxu0 %v627_v14 }
  0x42   :  { %586 = vmatpush3.bf16.msra.mxu1 %v668_v45 }
  0x43   :  { %587 = vmatprep.subr.bf16.mxu1 %v669_v46 }
  0x44   :  { %294 = vmatpush1.bf16.msra.mxu0 %v629_v18 }
  0x45   :  { %295 = vmatprep.subr.bf16.mxu0 %v630_v22 }
  0x46   :  { %588 = vmatpush3.bf16.msra.mxu1 %v670_v47 }
  0x47   :  { %589 = vmatprep.subr.bf16.mxu1 %v671_v48 }
  0x48   :  { %296 = vmatpush2.bf16.msra.mxu0 %v632_v23 }
  0x49   :  { %297 = vmatprep.subr.bf16.mxu0 %v633_v26 }
  0x4a   :  { %590 = vmatpush3.bf16.msra.mxu1 %v672_v49 }
  0x4c   :  { %298 = vmatpush2.bf16.msra.mxu0 %v635_v28 }
  0x4d   :  { %299 = vmatprep.subr.bf16.mxu0 %v636_v30 }
  0x50   :  { %300 = vmatpush2.bf16.msra.mxu0 %v638_v32 }
  0x51   :  { %301 = vmatprep.subr.bf16.mxu0 %v639_v33 }
  0x54   :  { %302 = vmatpush2.bf16.msra.mxu0 %v641_v34 }
  0x55   :  { %303 = vmatprep.subr.bf16.mxu0 %v642_v35 }
  0x58   :  { %304 = vmatpush2.bf16.msra.mxu0 %v644_v36 }
  0x59   :  { %305 = vmatprep.subr.bf16.mxu0 %v645_v37 }
  0x5c   :  { %306 = vmatpush2.bf16.msra.mxu0 %v647_v38 }
  0x5d   :  { %307 = vmatprep.subr.bf16.mxu0 %v648_v39 }
  0x60   :  { %308 = vmatpush2.bf16.msra.mxu0 %v650_v40 }
  0x61   :  { %309 = vmatprep.subr.bf16.mxu0 %v651_v41 }
  0x64   :  { %310 = vmatpush2.bf16.msra.mxu0 %v653_v42 }
  0x67   :  { %312 = vmatmul.mubr.bf16.vlgmr.msra.gmra.mxu0 %v654_v43 }
 0x127   :  { %v313_v55 = vpop.f32.mrf.mxu0 }
 0x128   :  { %v314_v62 = vadd.f32 %v313_v55, %v102_v57 }
 0x129   :  { %v315_v58 = vpop.f32.mrf.mxu0 }
 0x12a   :  { %v316_v60 = vadd.f32 %v315_v58, %v106_v56  ;;  %v322_v4 = vmax.f32 %v314_v62, 0.0 }
 0x12b   :  { %v317_v59 = vpop.f32.mrf.mxu0 }
 0x12c   :  { %v318_v61 = vadd.f32 %v317_v59, %v102_v57  ;;  %v323_v2 = vmax.f32 %v316_v60, 0.0 }
 0x12d   :  { %v319_v63 = vpop.f32.mrf.mxu0 }
 0x12e   :  { %v320_v0 = vadd.f32 %v319_v63, %v106_v56  ;;  %v324_v1 = vmax.f32 %v318_v61, 0.0 }
 0x130   :  { %v325_v3 = vmax.f32 %v320_v0, 0.0  ;;  %v326_v6 = vpack.c.bf16 %v324_v1, %v322_v4 }
 0x132   :  { %v327_v5 = vpack.c.bf16 %v325_v3, %v323_v2 }
 0x134   :  { %495 = vmatprep.mubr.bf16.mxu1 %v327_v5 }
 0x135   :  { %496 = vmatmul.mubr.bf16.vlgmr.msra.gmra.mxu1 %v326_v6 }
 0x1f5   :  { %v591_v7 = vpop.f32.mrf.mxu1 }
 0x1f7   :  { %v592_v9 = vpop.f32.mrf.mxu1 }
 0x1f8   :  { %v593_v10 = vadd.f32 %v592_v9, %v591_v7 }
 0x1f9   :  { %v594_v11 = vpop.f32.mrf.mxu1 }
 0x1fa   :  { %v498_v12 = vadd.f32 %v593_v10, %v558_v8 }
 0x1fb   :  { %v595_v13 = vpop.f32.mrf.mxu1 }
 0x1fc   :  { %504 = vst [vmem:[#allocation8] sm:$0xff] %v498_v12  ;;  %v596_v14 = vadd.f32 %v595_v13, %v594_v11 }
 0x1fe   :  { %v501_v15 = vadd.f32 %v596_v14, %v558_v8 }
 0x200   :  { %505 = vst [vmem:[#allocation8 + $0x8] sm:$0xff] %v501_v15 }
 0x201   :  { %744 = shalt.err (!%p741_p5)
}
 0x202   :  { %517 = dma.vmem_to_hbm [thread:$0]  %s512_s14, 256, %s829_s5, [#allocation4], %s761_s23, %s761_s23, %s762_s24  }
 0x203   :  { %757 = dma.done.wait [#allocation4], 256  }
 0x204   :  { %758 = vsyncadd [#allocation4], 4294967040 }
 0x205   :  { %521 = vsyncpa [#allocation3], 1 }
 0x206   :  { %522 = vsyncpa [#allocation6], 1 }
 0x207   :  { %523 = vsyncpa [#allocation4], 1 }

</bundles_post_ra>
